<compile_context>
chip_gen: v6e
topology: v6e:2x2x1
jax: 0.10.0
libtpu: 0.0.40
codegen_flags: <defaults>
</compile_context>

<pallas_src>
import functools

import jax
import jax.numpy as jnp
from jax.experimental import pallas as pl
from jax.experimental.pallas import tpu as pltpu

LN_EPS = 1e-5  # nn.LayerNorm default


def _round_up(a, m):
    return (a + m - 1) // m * m


@functools.lru_cache(maxsize=1)
def _tpu_generation():
    """Returns (physical_vmem_bytes, is_v7, is_v5)."""
    kind = ""
    try:
        kind = jax.devices()[0].device_kind.lower()
    except Exception:
        pass
    phys = None
    try:
        info = pltpu.get_tpu_info()
        cap = int(getattr(info, "vmem_capacity_bytes", 0) or 0)
        phys = cap if cap > 0 else None
    except Exception:
        phys = None
    if phys is None:
        phys = (64 if "v7" in kind else 128) * 1024 * 1024
    return phys, ("v7" in kind), ("v5" in kind)


def _layernorm(x_ref, gamma_ref, beta_ref, d_true, d_pad):
    """Row-wise LayerNorm of the current x tile; returns compute-dtype y."""
    x = x_ref[...].astype(jnp.float32)
    inv_d = jnp.float32(1.0 / d_true)
    mean = jnp.sum(x, axis=-1, keepdims=True) * inv_d        # padded lanes are 0
    centered = x - mean
    if d_pad != d_true:
        lane = jax.lax.broadcasted_iota(jnp.int32, x.shape, 1)
        centered = jnp.where(lane < d_true, centered, 0.0)    # exact variance
    var = jnp.sum(centered * centered, axis=-1, keepdims=True) * inv_d
    xn = centered * jax.lax.rsqrt(var + jnp.float32(LN_EPS))
    y = (xn * gamma_ref[...].astype(jnp.float32)
         + beta_ref[...].astype(jnp.float32))
    # Back to compute dtype (bf16 path feeds the MXU at its native rate).
    return y.astype(x_ref.dtype)


def _prenorm_single_kernel(x_ref, gamma_ref, beta_ref, w_ref, b_ref, o_ref,
                           *, d_true, d_pad):
    # Single output slab: LN result stays in registers and feeds the MXU
    # directly (no VMEM scratch store/reload).
    y = _layernorm(x_ref, gamma_ref, beta_ref, d_true, d_pad)
    out = jnp.dot(y, w_ref[...], preferred_element_type=jnp.float32)
    out = out + b_ref[...].astype(jnp.float32)
    o_ref[...] = out.astype(o_ref.dtype)


def _prenorm_tiled_kernel(x_ref, gamma_ref, beta_ref, w_ref, b_ref, o_ref,
                          y_ref, *, d_true, d_pad):
    # j (output-column slabs) MUST be the innermost, sequential ("arbitrary")
    # grid axis: the y scratch computed at j == 0 is reused for every slab of
    # the same row tile.
    j = pl.program_id(1)

    @pl.when(j == 0)
    def _():
        y_ref[...] = _layernorm(x_ref, gamma_ref, beta_ref, d_true, d_pad)

    out = jnp.dot(y_ref[...], w_ref[...], preferred_element_type=jnp.float32)
    out = out + b_ref[...].astype(jnp.float32)
    o_ref[...] = out.astype(o_ref.dtype)


@functools.partial(jax.jit, static_argnames=("tm", "tn"))
def prenorm_linear(x, gamma, beta, w, b, *, tm=None, tn=None):
    """x: (B, S, D); gamma/beta: (D,); w: (D, D_OUT); b: (D_OUT,)."""
    B, S, D = x.shape
    D_out = w.shape[1]
    N = B * S

    itemsize = jnp.dtype(x.dtype).itemsize
    sub = max(8, 32 // itemsize)          # sublane multiple: 8 f32, 16 bf16

    # Lane-dense padding of the channel dims.
    D_pad = _round_up(D, 128)
    D_out_pad = _round_up(D_out, 128)

    # ---- generation-aware VMEM budget -----------------------------------
    phys, is_v7, is_v5 = _tpu_generation()
    if phys <= 64 * 1024 * 1024:          # v7x-class
        budget = int(phys * 0.60)         # ~38 MiB
        vmem_limit = int(phys * 0.75)     # ~48 MiB
    else:                                 # v5e / v6e (128 MiB physical)
        budget = int(phys * 0.70)         # ~90 MiB
        vmem_limit = int(phys * 0.80)     # ~102 MiB

    # ---- row tile --------------------------------------------------------
    if tm is None:
        # ~2 MiB per x block per pipeline buffer, 256..1024 rows.
        tm = max(256, (2 * 1024 * 1024) // max(1, D_pad * itemsize))
        tm = min(tm, 1024)
    min_row_steps = 4 if is_v7 else 2     # v7x: 2 TCs split the parallel axis
    tm = min(int(tm), _round_up(pl.cdiv(N, min_row_steps), sub))
    tm = max(sub, _round_up(tm, sub))

    def small_bytes():
        # gamma + beta + bias blocks (double-buffered); negligible but counted.
        return 2 * (2 * D_pad + D_out_pad) * itemsize

    def fp_single(tm_):
        return itemsize * (2 * tm_ * D_pad          # x (double-buffered)
                           + 2 * tm_ * D_out_pad    # out (double-buffered)
                           + 2 * D_pad * D_out_pad  # resident W (2 buffers)
                           ) + small_bytes()

    def fp_tiled(tm_, tn_):
        return itemsize * (2 * tm_ * D_pad          # x
                           + tm_ * D_pad            # y scratch
                           + 2 * tm_ * tn_          # out
                           + 2 * D_pad * tn_        # W slab
                           ) + small_bytes()

    # ---- choose single-slab vs tiled output path -------------------------
    tm_floor = max(sub, min(tm, _round_up(256, sub)))
    use_single = (tn is None) or (int(tn) >= D_out_pad)
    if use_single:
        tm_s = tm
        while fp_single(tm_s) > budget and tm_s > tm_floor:
            tm_s = max(tm_floor, _round_up(tm_s // 2, sub))
        use_single = fp_single(tm_s) <= budget
        if use_single:
            tm = tm_s
            tn = D_out_pad

    if not use_single:
        # v6e/v7x MXU is 2x256x256: prefer 256-multiple slabs when possible.
        tn_mult = 256 if ((not is_v5) and D_out_pad % 256 == 0) else 128
        if tn is None:
            tn = min(512, D_out_pad)
        tn = max(tn_mult, _round_up(min(int(tn), D_out_pad), tn_mult))
        # Shrink whichever buffer dominates until the footprint fits.
        while fp_tiled(tm, tn) > budget:
            w_bytes = 2 * D_pad * tn * itemsize
            x_bytes = 3 * tm * D_pad * itemsize
            if w_bytes >= x_bytes and tn > tn_mult:
                tn = max(tn_mult, _round_up(tn // 2, tn_mult))
            elif tm > sub:
                tm = max(sub, _round_up(tm // 2, sub))
            elif tn > 128:
                tn = max(128, _round_up(tn // 2, 128))
            else:
                break  # TODO(synk): K-tiling needed here for extreme D.

    tn = int(tn)
    D_out_g = _round_up(D_out_pad, tn)    # grid-friendly output padding
    N_pad = _round_up(N, tm)

    # ---- pad operands (zeros keep the math exact) -------------------------
    x2 = jnp.pad(x.reshape(N, D), ((0, N_pad - N), (0, D_pad - D)))
    gamma2 = jnp.pad(gamma, (0, D_pad - D)).reshape(1, D_pad)
    beta2 = jnp.pad(beta, (0, D_pad - D)).reshape(1, D_pad)
    w2 = jnp.pad(w, ((0, D_pad - D), (0, D_out_g - D_out)))
    b2 = jnp.pad(b, (0, D_out_g - D_out)).reshape(1, D_out_g)

    if use_single:
        kernel = functools.partial(_prenorm_single_kernel, d_true=D, d_pad=D_pad)
        grid = (N_pad // tm,)
        in_specs = [
            pl.BlockSpec((tm, D_pad), lambda i: (i, 0)),          # x rows
            pl.BlockSpec((1, D_pad), lambda i: (0, 0)),           # gamma
            pl.BlockSpec((1, D_pad), lambda i: (0, 0)),           # beta
            pl.BlockSpec((D_pad, D_out_g), lambda i: (0, 0)),     # W (resident)
            pl.BlockSpec((1, D_out_g), lambda i: (0, 0)),         # bias
        ]
        out_specs = pl.BlockSpec((tm, D_out_g), lambda i: (i, 0))
        scratch = []
        dims = ("parallel",)
    else:
        kernel = functools.partial(_prenorm_tiled_kernel, d_true=D, d_pad=D_pad)
        grid = (N_pad // tm, D_out_g // tn)
        in_specs = [
            pl.BlockSpec((tm, D_pad), lambda i, j: (i, 0)),       # x rows
            pl.BlockSpec((1, D_pad), lambda i, j: (0, 0)),        # gamma
            pl.BlockSpec((1, D_pad), lambda i, j: (0, 0)),        # beta
            pl.BlockSpec((D_pad, tn), lambda i, j: (0, j)),       # W slab
            pl.BlockSpec((1, tn), lambda i, j: (0, j)),           # bias slab
        ]
        out_specs = pl.BlockSpec((tm, tn), lambda i, j: (i, j))
        scratch = [pltpu.VMEM((tm, D_pad), x.dtype)]              # cached y
        dims = ("parallel", "arbitrary")

    out2 = pl.pallas_call(
        kernel,
        out_shape=jax.ShapeDtypeStruct((N_pad, D_out_g), x.dtype),
        grid_spec=pltpu.PrefetchScalarGridSpec(
            num_scalar_prefetch=0,
            grid=grid,
            in_specs=in_specs,
            out_specs=out_specs,
            scratch_shapes=scratch),
        compiler_params=pltpu.CompilerParams(
            dimension_semantics=dims,
            vmem_limit_bytes=int(vmem_limit)),
    )(x2, gamma2, beta2, w2, b2)

    return out2[:N, :D_out].reshape(B, S, D_out)


def _reference(x, gamma, beta, w, b):
    xf = x.astype(jnp.float32)
    mean = jnp.mean(xf, axis=-1, keepdims=True)
    var = jnp.mean((xf - mean) ** 2, axis=-1, keepdims=True)
    xn = (xf - mean) * jax.lax.rsqrt(var + LN_EPS)
    y = xn * gamma.astype(jnp.float32) + beta.astype(jnp.float32)
    return y @ w.astype(jnp.float32) + b.astype(jnp.float32)


if __name__ == "__main__":
    # Small shapes consistent with PreNorm's transformer usage.
    B, S, D, D_OUT = 2, 8, 32, 32

    key = jax.random.PRNGKey(0)
    kx, kw, kb = jax.random.split(key, 3)

    x = jax.random.normal(kx, (B, S, D), dtype=jnp.float32)

    # nn.LayerNorm(dim) init: weight=1, bias=0
    gamma = jnp.ones((D,), dtype=jnp.float32)
    beta = jnp.zeros((D,), dtype=jnp.float32)

    # fn = Linear(D, D_OUT), deterministic init
    w = jax.random.normal(kw, (D, D_OUT), dtype=jnp.float32) * 0.02
    b = jax.random.normal(kb, (D_OUT,), dtype=jnp.float32) * 0.02

    # f32 path (single-slab fast path): exact match vs PyTorch semantics.
    out = jax.block_until_ready(prenorm_linear(x, gamma, beta, w, b))
    ref = _reference(x, gamma, beta, w, b)
    assert out.shape == (B, S, D_OUT), out.shape
    assert jnp.allclose(out, ref, atol=1e-4, rtol=1e-4), "f32 mismatch vs reference"

    # bf16 path: native-rate MXU operands, f32 LN stats / accumulation.
    # NOTE: y is intentionally cast to bf16 before the matmul (precision
    # deviation from PyTorch's f32 LayerNorm->Linear), hence 3e-2 tolerance.
    out_bf = jax.block_until_ready(
        prenorm_linear(x.astype(jnp.bfloat16),
                       gamma.astype(jnp.bfloat16),
                       beta.astype(jnp.bfloat16),
                       w.astype(jnp.bfloat16),
                       b.astype(jnp.bfloat16)))
    assert out_bf.shape == (B, S, D_OUT), out_bf.shape
    assert jnp.allclose(out_bf.astype(jnp.float32), ref, atol=3e-2, rtol=3e-2), \
        "bf16 mismatch vs reference"

    # Odd dims + forced output-column tiling: exercises lane masking (D=48),
    # output padding/slicing, and the tiled (j-axis + y scratch) kernel path.
    D2, D_OUT2 = 48, 512
    kx2, kw2, kb2, kg2, kbt2 = jax.random.split(jax.random.PRNGKey(1), 5)
    x_odd = jax.random.normal(kx2, (B, S, D2), dtype=jnp.float32)
    g_odd = 1.0 + 0.1 * jax.random.normal(kg2, (D2,), dtype=jnp.float32)
    bt_odd = 0.1 * jax.random.normal(kbt2, (D2,), dtype=jnp.float32)
    w_odd = jax.random.normal(kw2, (D2, D_OUT2), dtype=jnp.float32) * 0.02
    b_odd = jax.random.normal(kb2, (D_OUT2,), dtype=jnp.float32) * 0.02
    out_odd = jax.block_until_ready(
        prenorm_linear(x_odd, g_odd, bt_odd, w_odd, b_odd, tn=128))
    ref_odd = _reference(x_odd, g_odd, bt_odd, w_odd, b_odd)
    assert out_odd.shape == (B, S, D_OUT2), out_odd.shape
    assert jnp.allclose(out_odd, ref_odd, atol=1e-4, rtol=1e-4), \
        "odd-dims mismatch vs reference"

    print("KERNEL_OK")
</pallas_src>

<mosaic_0001>
module attributes {stable_mosaic.version = 11 : i64} {
  func.func @_prenorm_single_kernel(%arg0: i32, %arg1: memref<8x128xf32, #tpu.memory_space<vmem>>, %arg2: memref<1x128xf32, #tpu.memory_space<vmem>>, %arg3: memref<1x128xf32, #tpu.memory_space<vmem>>, %arg4: memref<128x128xf32, #tpu.memory_space<vmem>>, %arg5: memref<1x128xf32, #tpu.memory_space<vmem>>, %arg6: memref<8x128xf32, #tpu.memory_space<vmem>>) attributes {dimension_semantics = [#tpu.dimension_semantics<parallel>], iteration_bounds = array<i64: 2>, scalar_prefetch = 0 : i64, scratch_operands = 0 : i64, tpu.core_type = #tpu.core_type<tc>, window_params = [{transform_indices = @transform_0, window_bounds = array<i64: 8, 128>}, {pipeline_mode = #tpu.pipeline_mode<synchronous>, transform_indices = @transform_1, window_bounds = array<i64: 1, 128>}, {pipeline_mode = #tpu.pipeline_mode<synchronous>, transform_indices = @transform_2, window_bounds = array<i64: 1, 128>}, {pipeline_mode = #tpu.pipeline_mode<synchronous>, transform_indices = @transform_3, window_bounds = array<i64: 128, 128>}, {pipeline_mode = #tpu.pipeline_mode<synchronous>, transform_indices = @transform_4, window_bounds = array<i64: 1, 128>}, {transform_indices = @transform_5, window_bounds = array<i64: 8, 128>}]} {
    %c0 = arith.constant 0 : index
    %c0_0 = arith.constant 0 : index
    %0 = vector.load %arg1[%c0, %c0_0] : memref<8x128xf32, #tpu.memory_space<vmem>>, vector<8x128xf32>
    %cst = arith.constant dense<0.000000e+00> : vector<8xf32>
    %1 = vector.multi_reduction <add>, %0, %cst [1] : vector<8x128xf32> to vector<8xf32>
    %2 = vector.shape_cast %1 : vector<8xf32> to vector<8x1xf32>
    %cst_1 = arith.constant 3.125000e-02 : f32
    %3 = vector.broadcast %cst_1 : f32 to vector<8x1xf32>
    %4 = arith.mulf %2, %3 : vector<8x1xf32>
    %5 = vector.broadcast %4 : vector<8x1xf32> to vector<8x128xf32>
    %6 = arith.subf %0, %5 : vector<8x128xf32>
    %7 = tpu.iota {dimensions = array<i32: 1>} : vector<8x128xi32>
    %c32_i32 = arith.constant 32 : i32
    %8 = vector.broadcast %c32_i32 : i32 to vector<8x128xi32>
    %9 = arith.cmpi slt, %7, %8 : vector<8x128xi32>
    %cst_2 = arith.constant 0.000000e+00 : f32
    %10 = vector.broadcast %cst_2 : f32 to vector<8x128xf32>
    %11 = arith.select %9, %6, %10 : vector<8x128xi1>, vector<8x128xf32>
    %12 = arith.mulf %11, %11 : vector<8x128xf32>
    %cst_3 = arith.constant dense<0.000000e+00> : vector<8xf32>
    %13 = vector.multi_reduction <add>, %12, %cst_3 [1] : vector<8x128xf32> to vector<8xf32>
    %14 = vector.shape_cast %13 : vector<8xf32> to vector<8x1xf32>
    %cst_4 = arith.constant 3.125000e-02 : f32
    %15 = vector.broadcast %cst_4 : f32 to vector<8x1xf32>
    %16 = arith.mulf %14, %15 : vector<8x1xf32>
    %cst_5 = arith.constant 9.99999974E-6 : f32
    %17 = vector.broadcast %cst_5 : f32 to vector<8x1xf32>
    %18 = arith.addf %16, %17 : vector<8x1xf32>
    %19 = math.rsqrt %18 : vector<8x1xf32>
    %20 = vector.broadcast %19 : vector<8x1xf32> to vector<8x128xf32>
    %21 = arith.mulf %11, %20 : vector<8x128xf32>
    %c0_6 = arith.constant 0 : index
    %c0_7 = arith.constant 0 : index
    %22 = vector.load %arg2[%c0_6, %c0_7] : memref<1x128xf32, #tpu.memory_space<vmem>>, vector<1x128xf32>
    %23 = vector.broadcast %22 : vector<1x128xf32> to vector<8x128xf32>
    %24 = arith.mulf %21, %23 : vector<8x128xf32>
    %c0_8 = arith.constant 0 : index
    %c0_9 = arith.constant 0 : index
    %25 = vector.load %arg3[%c0_8, %c0_9] : memref<1x128xf32, #tpu.memory_space<vmem>>, vector<1x128xf32>
    %26 = vector.broadcast %25 : vector<1x128xf32> to vector<8x128xf32>
    %27 = arith.addf %24, %26 : vector<8x128xf32>
    %c0_10 = arith.constant 0 : index
    %c0_11 = arith.constant 0 : index
    %28 = vector.load %arg4[%c0_10, %c0_11] : memref<128x128xf32, #tpu.memory_space<vmem>>, vector<128x128xf32>
    %cst_12 = arith.constant dense<0.000000e+00> : vector<8x128xf32>
    %29 = tpu.matmul %27, %28, %cst_12 {dimension_numbers = #tpu.dot_dimension_numbers<[1], [0], [0], [1], [0, 0, 1, 1], [], []>} : vector<8x128xf32>, vector<128x128xf32>, vector<8x128xf32> -> vector<8x128xf32>
    %c0_13 = arith.constant 0 : index
    %c0_14 = arith.constant 0 : index
    %30 = vector.load %arg5[%c0_13, %c0_14] : memref<1x128xf32, #tpu.memory_space<vmem>>, vector<1x128xf32>
    %31 = vector.broadcast %30 : vector<1x128xf32> to vector<8x128xf32>
    %32 = arith.addf %29, %31 : vector<8x128xf32>
    %c0_15 = arith.constant 0 : index
    %c0_16 = arith.constant 0 : index
    %33 = vector.load %arg6[%c0_15, %c0_16] : memref<8x128xf32, #tpu.memory_space<vmem>>, vector<8x128xf32>
    tpu.vector_store %arg6[%c0_15, %c0_16], %32 {strides = array<i32>} : memref<8x128xf32, #tpu.memory_space<vmem>>, vector<8x128xf32>,
    return
  }
  func.func @transform_0(%arg0: i32) -> (i32, i32) {
    %c0_i32 = arith.constant 0 : i32
    %c0_i32_0 = arith.constant 0 : i32
    return %arg0, %c0_i32 : i32, i32
  }
  func.func @transform_1(%arg0: i32) -> (i32, i32) {
    %c0_i32 = arith.constant 0 : i32
    %c0_i32_0 = arith.constant 0 : i32
    %c0_i32_1 = arith.constant 0 : i32
    return %c0_i32, %c0_i32_0 : i32, i32
  }
  func.func @transform_2(%arg0: i32) -> (i32, i32) {
    %c0_i32 = arith.constant 0 : i32
    %c0_i32_0 = arith.constant 0 : i32
    %c0_i32_1 = arith.constant 0 : i32
    return %c0_i32, %c0_i32_0 : i32, i32
  }
  func.func @transform_3(%arg0: i32) -> (i32, i32) {
    %c0_i32 = arith.constant 0 : i32
    %c0_i32_0 = arith.constant 0 : i32
    %c0_i32_1 = arith.constant 0 : i32
    return %c0_i32, %c0_i32_0 : i32, i32
  }
  func.func @transform_4(%arg0: i32) -> (i32, i32) {
    %c0_i32 = arith.constant 0 : i32
    %c0_i32_0 = arith.constant 0 : i32
    %c0_i32_1 = arith.constant 0 : i32
    return %c0_i32, %c0_i32_0 : i32, i32
  }
  func.func @transform_5(%arg0: i32) -> (i32, i32) {
    %c0_i32 = arith.constant 0 : i32
    %c0_i32_0 = arith.constant 0 : i32
    return %arg0, %c0_i32 : i32, i32
  }
}

</mosaic_0001>

<bundles_post_ra>
// kernel: prenorm_linear.1
= control target key start
LH: loop header
LB: loop body
LE: loop exit
PB: predicated region body
PF: predicated region fallthrough
CT: control target
= control target key end

     0   :  { %s515_s18 = smov 0   ;;  %s596_s0 = inlined_call_operand.vmem [shape: f32[16,128], index: 0, kind: input, shape index: {}]   ;;  %s597_s1 = inlined_call_operand.vmem [shape: f32[1,128], index: 1, kind: input, shape index: {}]   ;;  %s598_s2 = inlined_call_operand.vmem [shape: f32[1,128], index: 2, kind: input, shape index: {}]   ;;  %s599_s3 = inlined_call_operand.vmem [shape: f32[128,128], index: 3, kind: input, shape index: {}]   ;;  %s600_s4 = inlined_call_operand.vmem [shape: f32[1,128], index: 4, kind: input, shape index: {}]   ;;  %s601_s5 = inlined_call_operand.vmem [shape: f32[16,128], index: 5, kind: output, shape index: {}]  }
   0x1 LB: > { %s399_s19 = sadd.s32 4294967295, %s481_s18   ;;  %p403_p0 = scmp.ge.s32.totalorder %s481_s18, 1  ;;  %s481_s18 = sphi %s515_s18, %s15_s18  }
   0x2   : > { %p186_p1 = scmp.lt.s32.totalorder %s481_s18, 3 }
   0x4   : > { %p187_p2 = pnand %p403_p0, %p186_p1 }
   0x5   : > { %p212_p3 = scmp.lt.s32.totalorder (!%p187_p2), %s399_s19, 1 }
   0x6   : > { %190 = sbr.rel (%p187_p2) target bundleno = 518 (0x206), region = 40 }
   0xb   : > { %s603_s19 = smov (!%p212_p3, %s399_s19), 1  ;;  %v267_v1 = vld [vmem:[%s599_s3 + $0x78] sm:$0xff]  ;;  %v483_v2 = vmov 0.0   ;;  %v266_v3 = vld [vmem:[%s599_s3 + $0x70] sm:$0xff]  ;;  %v265_v4 = vld [vmem:[%s599_s3 + $0x68] sm:$0xff]  ;;  %v225_v6 = vlaneseq  ;;  %vm484_vm1 = vmmov 0  }
   0xc   : > { %s404_s20 = sshll.u32 %s603_s19, 3  ;;  %428 = vmatprep.subr.mxu0 %v483_v2  ;;  %v264_v5 = vld [vmem:[%s599_s3 + $0x60] sm:$0xff]  ;;  %v263_v13 = vld [vmem:[%s599_s3 + $0x58] sm:$0xff]  ;;  %v262_v14 = vld [vmem:[%s599_s3 + $0x50] sm:$0xff]  ;;  %460 = vmatprep.mubr.msk.f32.mxu0 %vm484_vm1, %v483_v2 }
   0xd   : > { %s215_s23 = scalar_lea.vmem %s596_s0, %s404_s20  ;;  %429 = vmatpush3.msra.mxu0 %v267_v1  ;;  %v226_v7 = vand.u32 127, %v225_v6  ;;  %v261_v15 = vld [vmem:[%s599_s3 + $0x48] sm:$0xff]  ;;  %v260_v16 = vld [vmem:[%s599_s3 + $0x40] sm:$0xff]  ;;  %v259_v17 = vld [vmem:[%s599_s3 + $0x38] sm:$0xff]  ;;  %s219_s17 = scalar_lea.vmem %s601_s5, %s404_s20 }
   0xe   : > { %v220_v0 = vld [vmem:[%s215_s23] sm:$0xff]  ;;  %430 = vmatprep.subr.mxu0 %v483_v2  ;;  %v258_v18 = vld [vmem:[%s599_s3 + $0x30] sm:$0xff]  ;;  %v257_v19 = vld [vmem:[%s599_s3 + $0x28] sm:$0xff] }
   0xf   : > { %221 = vadd.xlane.f32.xlu0 %v220_v0  ;;  %431 = vmatpush3.msra.mxu0 %v266_v3  ;;  %vm227_vm0 = vcmp.lt.s32.totalorder %v226_v7, 32  ;;  %v256_v20 = vld [vmem:[%s599_s3 + $0x20] sm:$0xff]  ;;  %v255_v21 = vld [vmem:[%s599_s3 + $0x18] sm:$0xff]  ;;  %v254_v22 = vld [vmem:[%s599_s3 + $0x10] sm:$0xff] }
  0x10   : > { %432 = vmatprep.subr.mxu0 %v483_v2  ;;  %v253_v23 = vld [vmem:[%s599_s3 + $0x8] sm:$0xff]  ;;  %v252_v24 = vld [vmem:[%s599_s3] sm:$0xff] }
  0x11   : > { %433 = vmatpush3.msra.mxu0 %v265_v4  ;;  %v406_v29 = vld [vmem:[%s597_s1] ss:$0 sm:$0xff] }
  0x12   : > { %434 = vmatprep.subr.mxu0 %v483_v2  ;;  %v407_v31 = vld [vmem:[%s598_s2] ss:$0 sm:$0xff] }
  0x13   : > { %435 = vmatpush3.msra.mxu0 %v264_v5  ;;  %v408_v34 = vld [vmem:[%s600_s4] ss:$0 sm:$0xff] }
  0x14   : > { %436 = vmatprep.subr.mxu0 %v483_v2 }
  0x15   : > { %437 = vmatpush3.msra.mxu0 %v263_v13 }
  0x16   : > { %438 = vmatprep.subr.mxu0 %v483_v2 }
  0x17   : > { %439 = vmatpush3.msra.mxu0 %v262_v14 }
  0x18   : > { %440 = vmatprep.subr.mxu0 %v483_v2 }
  0x19   : > { %441 = vmatpush3.msra.mxu0 %v261_v15 }
  0x1a   : > { %442 = vmatprep.subr.mxu0 %v483_v2 }
  0x1b   : > { %443 = vmatpush3.msra.mxu0 %v260_v16 }
  0x1c   : > { %444 = vmatprep.subr.mxu0 %v483_v2 }
  0x1d   : > { %445 = vmatpush3.msra.mxu0 %v259_v17 }
  0x1e   : > { %446 = vmatprep.subr.mxu0 %v483_v2 }
  0x1f   : > { %447 = vmatpush3.msra.mxu0 %v258_v18 }
  0x20   : > { %448 = vmatprep.subr.mxu0 %v483_v2 }
  0x21   : > { %449 = vmatpush3.msra.mxu0 %v257_v19 }
  0x22   : > { %450 = vmatprep.subr.mxu0 %v483_v2 }
  0x23   : > { %451 = vmatpush3.msra.mxu0 %v256_v20 }
  0x24   : > { %452 = vmatprep.subr.mxu0 %v483_v2 }
  0x25   : > { %453 = vmatpush3.msra.mxu0 %v255_v21 }
  0x26   : > { %454 = vmatprep.subr.mxu0 %v483_v2 }
  0x27   : > { %455 = vmatpush3.msra.mxu0 %v254_v22 }
  0x28   : > { %456 = vmatprep.subr.mxu0 %v483_v2 }
  0x29   : > { %457 = vmatpush3.msra.mxu0 %v253_v23 }
  0x2a   : > { %458 = vmatprep.subr.mxu0 %v483_v2 }
  0x2b   : > { %459 = vmatpush3.msra.mxu0 %v252_v24 }
  0x98   : > { %v222_v8 = vpop.xlane.xlu0 %221 }
  0x99   : > { %v223_v9 = vmul.f32 0.03125, %v222_v8 }
  0x9b   : > { %v224_v10 = vsub.f32 %v220_v0, %v223_v9 }
  0x9d   : > { %v228_v11 = vsel %vm227_vm0, %v224_v10, 0.0 }
  0x9e   : > { %v229_v12 = vmul.f32 %v228_v11, %v228_v11 }
  0xa0   : > { %230 = vadd.xlane.f32.xlu0 %v229_v12 }
 0x129   : > { %v231_v25 = vpop.xlane.xlu0 %230 }
 0x12a   : > { %v232_v26 = vmul.f32 0.03125, %v231_v25 }
 0x12c   : > { %v233_v27 = vadd.f32 1e-05, %v232_v26 }
 0x12e   : > { %473 = vrsqrt.f32 %v233_v27 }
 0x13b   : > { %v474_v28 = vpop.eup %473 }
 0x13c   : > { %v235_v30 = vmul.f32 %v474_v28, %v228_v11 }
 0x13e   : > { %v243_v32 = vmul.f32 %v406_v29, %v235_v30 }
 0x140   : > { %v251_v33 = vadd.f32 %v407_v31, %v243_v32 }
 0x142   : > { %461 = vmatmul.mubr.f32.vlgmr.msra.gmra.mxu0 %v251_v33 }
 0x202   : > { %v341_v35 = vpop.f32.mrf.mxu0 }
 0x203   : > { %v342_v36 = vadd.f32 %v408_v34, %v341_v35 }
 0x204   : > { %v462_v37 = vpop.f32.mrf.mxu0 }
 0x205   : > { %345 = vst [vmem:[%s219_s17] sm:$0xff] %v342_v36 }
 0x206 PF: > { %s15_s18 = sadd.s32 1, %s481_s18  }
 0x207   : > { %p12_p4 = scmp.ge.s32.totalorder %s15_s18, 4  }
 0x209   :  { %14 = sbr.rel (!%p12_p4) target bundleno = 1 (0x1), region = 70 }

</bundles_post_ra>
